<compile_context>
chip_gen: v7x
topology: tpu7x:2x2x1
jax: 0.10.0
libtpu: 0.0.40
codegen_flags: <defaults>
</compile_context>

<pallas_src>
import math
from functools import partial

import jax
import jax.numpy as jnp
from jax import lax
from jax.experimental import pallas as pl
from jax.experimental.pallas import tpu as pltpu


def _round_up(x, m):
    return ((x + m - 1) // m) * m


def _embed_onehot_kernel(idx_ref, emb_ref, out_ref, *, scale):
    """Gather T embedding rows via one-hot matmul and scale by sqrt(d_model).

    idx_ref : (T, 1)           int32  VMEM  — indices for this tile
    emb_ref : (V_pad, D_pad)   float  VMEM  — full (padded) table, resident
    out_ref : (T, D_pad)       float  VMEM
    """
    n_vocab = emb_ref.shape[0]
    t = out_ref.shape[0]

    idx = idx_ref[...]                                              # (T, 1)
    vocab_iota = lax.broadcasted_iota(jnp.int32, (t, n_vocab), 1)   # (T, V_pad)
    onehot = (vocab_iota == idx).astype(emb_ref.dtype)              # lane-broadcast cmp

    # MXU gather: exactly one 1.0 per row; HIGHEST precision keeps f32 exact.
    gathered = jnp.dot(
        onehot,
        emb_ref[...],
        preferred_element_type=jnp.float32,
        precision=lax.Precision.HIGHEST,
    )
    out_ref[...] = (gathered * scale).astype(out_ref.dtype)


def nodedeg_embedding(x_idx, emb_table, *, tile_rows=1024):
    """Pallas implementation of nodedegEmbedding.forward.

    Args:
      x_idx:     integer array of arbitrary shape (e.g. (B, S)), values in
                 [0, n_vocab).  Out-of-range values yield zero rows (no fault).
      emb_table: float array (n_vocab, d_model), the nn.Embedding weight.
      tile_rows: requested number of gathered rows per grid step (multiple of 8).

    Returns:
      float array of shape x_idx.shape + (d_model,).
    """
    n_vocab, d_model = emb_table.shape
    orig_shape = x_idx.shape
    idx_flat = x_idx.reshape(-1).astype(jnp.int32)
    n = idx_flat.shape[0]
    scale = float(math.sqrt(d_model))

    # Pad the table so the MXU K dim and the output lane dim are full 128-wide
    # tiles (lane-dense stores; no masked vst).  Padding rows/cols are zeros.
    v_pad = _round_up(n_vocab, 128)
    d_pad = _round_up(d_model, 128)
    emb_pad = emb_table
    if (v_pad, d_pad) != (n_vocab, d_model):
        emb_pad = jnp.pad(emb_table, ((0, v_pad - n_vocab), (0, d_pad - d_model)))
    itemsize = emb_pad.dtype.itemsize

    # Tile size: multiple of 8 sublanes, capped so the resident table, the
    # double-buffered idx/out tiles and the (T, V_pad) one-hot temp fit a
    # conservative VMEM budget (valid on v5e / v6e / v7x).
    vmem_budget = 24 << 20
    table_bytes = v_pad * d_pad * itemsize
    per_row_bytes = (
        2 * (d_pad * itemsize + 4)      # double-buffered out tile + idx tile
        + v_pad * 4                     # one-hot temp row (f32)
        + d_pad * 4                     # f32 accumulator row
    )
    t_cap = max(((vmem_budget - table_bytes) // max(per_row_bytes, 1)) // 8 * 8, 8)
    t = min(_round_up(tile_rows, 8), _round_up(n, 8), int(t_cap))

    n_pad = pl.cdiv(n, t) * t
    if n_pad != n:
        idx_flat = jnp.pad(idx_flat, (0, n_pad - n))  # pad with row 0; sliced off below
    idx_2d = idx_flat.reshape(n_pad, 1)

    grid = (n_pad // t,)

    # Explicit VMEM limit with headroom, capped at 32 MiB (fits every generation,
    # including v7x's 64 MiB physical VMEM).
    vmem_limit = int(
        min(
            max(table_bytes + t * per_row_bytes + (2 << 20), 4 << 20),
            32 << 20,
        )
    )

    out_flat = pl.pallas_call(
        partial(_embed_onehot_kernel, scale=scale),
        out_shape=jax.ShapeDtypeStruct((n_pad, d_pad), emb_pad.dtype),
        grid_spec=pltpu.PrefetchScalarGridSpec(
            num_scalar_prefetch=0,
            grid=grid,
            in_specs=[
                # T indices per step, laid out along sublanes.
                pl.BlockSpec((t, 1), lambda i: (i, 0)),
                # Full (padded) embedding table, resident in VMEM (constant
                # block index => fetched once, reused across all grid steps).
                pl.BlockSpec((v_pad, d_pad), lambda i: (0, 0)),
            ],
            out_specs=pl.BlockSpec((t, d_pad), lambda i: (i, 0)),
        ),
        compiler_params=pltpu.CompilerParams(
            dimension_semantics=("parallel",),
            vmem_limit_bytes=vmem_limit,
        ),
    )(idx_2d, emb_pad)

    return out_flat[:n, :d_model].reshape(*orig_shape, d_model)


if __name__ == "__main__":
    # Small, deterministic problem consistent with the module's forward.
    n_vocab = 16
    d_model = 32
    B, S = 2, 8

    key = jax.random.PRNGKey(0)
    k_w, k_x = jax.random.split(key)

    # nn.Embedding default init: weights ~ N(0, 1).
    emb_table = jax.random.normal(k_w, (n_vocab, d_model), dtype=jnp.float32)
    x_idx = jax.random.randint(k_x, (B, S), 0, n_vocab, dtype=jnp.int32)

    out = nodedeg_embedding(x_idx, emb_table)
    out = jax.block_until_ready(out)

    # Reference check against plain-JAX gather * sqrt(d_model).
    ref = emb_table[x_idx] * math.sqrt(d_model)
    assert out.shape == (B, S, d_model), out.shape
    assert jnp.allclose(out, ref, atol=1e-5, rtol=1e-5), "mismatch vs reference"

    print("KERNEL_OK")
</pallas_src>

<mosaic_0001>
module attributes {stable_mosaic.version = 11 : i64} {
  func.func @_embed_onehot_kernel(%arg0: i32, %arg1: memref<16x1xi32, #tpu.memory_space<vmem>>, %arg2: memref<128x128xf32, #tpu.memory_space<vmem>>, %arg3: memref<16x128xf32, #tpu.memory_space<vmem>>) attributes {dimension_semantics = [#tpu.dimension_semantics<parallel>], iteration_bounds = array<i64: 1>, scalar_prefetch = 0 : i64, scratch_operands = 0 : i64, tpu.core_type = #tpu.core_type<tc>, window_params = [{transform_indices = @transform_0, window_bounds = array<i64: 16, 1>}, {pipeline_mode = #tpu.pipeline_mode<synchronous>, transform_indices = @transform_1, window_bounds = array<i64: 128, 128>}, {transform_indices = @transform_2, window_bounds = array<i64: 16, 128>}]} {
    %c0 = arith.constant 0 : index
    %c0_0 = arith.constant 0 : index
    %0 = vector.load %arg1[%c0, %c0_0] : memref<16x1xi32, #tpu.memory_space<vmem>>, vector<16x1xi32>
    %1 = tpu.iota {dimensions = array<i32: 1>} : vector<16x128xi32>
    %2 = vector.broadcast %0 : vector<16x1xi32> to vector<16x128xi32>
    %3 = arith.cmpi eq, %1, %2 : vector<16x128xi32>
    %4 = arith.extui %3 : vector<16x128xi1> to vector<16x128xi32>
    %5 = arith.sitofp %4 : vector<16x128xi32> to vector<16x128xf32>
    %c0_1 = arith.constant 0 : index
    %c0_2 = arith.constant 0 : index
    %6 = vector.load %arg2[%c0_1, %c0_2] : memref<128x128xf32, #tpu.memory_space<vmem>>, vector<128x128xf32>
    %cst = arith.constant dense<0.000000e+00> : vector<16x128xf32>
    %7 = tpu.matmul %5, %6, %cst {dimension_numbers = #tpu.dot_dimension_numbers<[1], [0], [0], [1], [0, 0, 1, 1], [], []>, precision = #tpu.contract_precision<fp32>} : vector<16x128xf32>, vector<128x128xf32>, vector<16x128xf32> -> vector<16x128xf32>
    %cst_3 = arith.constant 5.65685415 : f32
    %8 = vector.broadcast %cst_3 : f32 to vector<16x128xf32>
    %9 = arith.mulf %7, %8 : vector<16x128xf32>
    %c0_4 = arith.constant 0 : index
    %c0_5 = arith.constant 0 : index
    %10 = vector.load %arg3[%c0_4, %c0_5] : memref<16x128xf32, #tpu.memory_space<vmem>>, vector<16x128xf32>
    tpu.vector_store %arg3[%c0_4, %c0_5], %9 {strides = array<i32>} : memref<16x128xf32, #tpu.memory_space<vmem>>, vector<16x128xf32>,
    return
  }
  func.func @transform_0(%arg0: i32) -> (i32, i32) {
    %c0_i32 = arith.constant 0 : i32
    %c0_i32_0 = arith.constant 0 : i32
    return %arg0, %c0_i32 : i32, i32
  }
  func.func @transform_1(%arg0: i32) -> (i32, i32) {
    %c0_i32 = arith.constant 0 : i32
    %c0_i32_0 = arith.constant 0 : i32
    %c0_i32_1 = arith.constant 0 : i32
    return %c0_i32, %c0_i32_0 : i32, i32
  }
  func.func @transform_2(%arg0: i32) -> (i32, i32) {
    %c0_i32 = arith.constant 0 : i32
    %c0_i32_0 = arith.constant 0 : i32
    return %arg0, %c0_i32 : i32, i32
  }
}

</mosaic_0001>

<bundles_post_ra>
// kernel: tpu_custom_call.1
= control target key start
LH: loop header
LB: loop body
LE: loop exit
PB: predicated region body
PF: predicated region fallthrough
CT: control target
= control target key end

     0   :  { %7 = vsyncpa [#allocation3], 0  ;;  %s1661_s0 = inlined_call_operand.vmem [shape: s32[16,1], index: 0, kind: input, shape index: {}]   ;;  %s1662_s1 = inlined_call_operand.hbm [shape: f32[128,128], index: 1, kind: input, shape index: {}]   ;;  %s1663_s2 = inlined_call_operand.hbm [shape: f32[16,128], index: 2, kind: output, shape index: {}]  }
   0x1   :  { %8 = vsyncpa [#allocation4], 0  ;;  %s1347_s9 = smov [#allocation2]   ;;  %s1299_s13 = scalar_lea.hbm %s1662_s1, 2048 }
   0x2   :  { %s16_s10 = sshll.u32 %s1347_s9, 4  ;;  %p1300_p0 = scmp.ne.s32.totalorder %s1662_s1, %s1299_s13  ;;  %s17_s10 = int_to_ptr.vmem [resolvable:$true] %s16_s10 }
   0x3   :  { %p1303_p1 = scmp.lt.u32.totalorder %s1299_s13, %s1662_s1 }
   0x5   :  { %p1305_p2 = pnand %p1303_p1, %p1300_p0 }
   0x7   :  { %1308 = shalt.err (!%p1305_p2)
}
   0x8   :  { %s1309_s18 = scalar_lea.vmem %s17_s10, 2048  ;;  %p1314_p4 = scmp.lt.s32.totalorder %s17_s10, %s17_s10 }
   0x9   :  { %p1310_p3 = scmp.ne.s32.totalorder %s17_s10, %s1309_s18  ;;  %p1315_p5 = scmp.lt.s32.totalorder %s1309_s18, %s1309_s18 }
   0xb   :  { %p1316_p6 = por %p1315_p5, %p1314_p4 }
   0xd   :  { %p1317_p7 = pnand %p1316_p6, %p1310_p3 }
   0xf   :  { %1320 = shalt.err (!%p1317_p7)
}
  0x10   :  { %s1348_s19 = smov 128   ;;  %s1349_s20 = smov 8  }
  0x11   :  { %22 = dma.hbm_to_vmem [thread:$0]  %s1662_s1, 2048, %s17_s10, [#allocation3], %s1348_s19, %s1348_s19, %s1349_s20  }
  0x12   :  { %1343 = dma.done.wait [#allocation3], 2048  }
  0x13   :  { %1344 = vsyncadd [#allocation3], 4294965248  ;;  %v1350_v0 = vmov 0   ;;  %v26_v1 = vld [vmem:[%s1661_s0] sm:$0xff]  ;;  %v43_v3 = vld [vmem:[#allocation2 + $0x8] sm:$0xff] }
  0x14   :  { %1298 = vset.pattern.permute.xlu0 %v1350_v0  ;;  %v42_v2 = vld [vmem:[#allocation2] sm:$0xff]  ;;  %v44_v5 = vld [vmem:[#allocation2 + $0x10] sm:$0xff]  ;;  %v45_v6 = vld [vmem:[#allocation2 + $0x18] sm:$0xff]  ;;  %v62_v8 = vand.u32 4294901760, %v43_v3 }
  0x15   :  { %31 = vperm.xlu0 %1298, %v26_v1   ;;  %v59_v4 = vand.u32 4294901760, %v42_v2  ;;  %v27_v7 = vld [vmem:[%s1661_s0 + $0x8] sm:$0xff]  ;;  %v65_v9 = vand.u32 4294901760, %v44_v5  ;;  %v68_v10 = vand.u32 4294901760, %v45_v6  ;;  %v46_v11 = vld [vmem:[#allocation2 + $0x20] sm:$0xff]  ;;  %v48_v17 = vld [vmem:[#allocation2 + $0x30] sm:$0xff] }
  0x16   :  { %v47_v12 = vld [vmem:[#allocation2 + $0x28] sm:$0xff]  ;;  %v71_v15 = vand.u32 4294901760, %v46_v11  ;;  %v49_v18 = vld [vmem:[#allocation2 + $0x38] sm:$0xff]  ;;  %v77_v20 = vand.u32 4294901760, %v48_v17  ;;  %v50_v22 = vld [vmem:[#allocation2 + $0x40] sm:$0xff]  ;;  %v1440_v46 = vsub.f32 %v43_v3, %v62_v8  ;;  %s1353_s0 = smov [#allocation5]  }
  0x17   :  { %v1390_v13 = vpack.c.bf16 %v62_v8, %v59_v4  ;;  %v1392_v14 = vpack.c.bf16 %v68_v10, %v65_v9  ;;  %v74_v16 = vand.u32 4294901760, %v47_v12  ;;  %v80_v21 = vand.u32 4294901760, %v49_v18  ;;  %v51_v23 = vld [vmem:[#allocation2 + $0x48] sm:$0xff]  ;;  %v1408_v28 = vld [vmem:[#allocation2 + $0x50] sm:$0xff]  ;;  %v1416_v32 = vld [vmem:[#allocation2 + $0x58] sm:$0xff]  ;;  %s751_s1 = sshll.u32 %s1353_s0, 4  ;;  %s752_s1 = int_to_ptr.vmem [resolvable:$true] %s751_s1 }
  0x18   :  { %v1402_v24 = vsub.f32 %v44_v5, %v65_v9  ;;  %v1404_v25 = vsub.f32 %v45_v6, %v68_v10  ;;  %v83_v26 = vand.u32 4294901760, %v50_v22  ;;  %v86_v27 = vand.u32 4294901760, %v51_v23  ;;  %v1432_v41 = vld [vmem:[#allocation2 + $0x60] sm:$0xff]  ;;  %v1436_v44 = vld [vmem:[#allocation2 + $0x68] sm:$0xff]  ;;  %v1460_v58 = vld [vmem:[#allocation2 + $0x70] sm:$0xff]  ;;  %s1321_s27 = scalar_lea.vmem %s752_s1, 256  ;;  %p1326_p9 = scmp.lt.s32.totalorder %s752_s1, %s752_s1 }
  0x19   :  { %34 = vperm.xlu0 %1298, %v27_v7   ;;  %1186 = vmatprep.subr.bf16.mxu0 %v1390_v13  ;;  %v1400_v19 = vpack.c.bf16 %v74_v16, %v71_v15  ;;  %v1414_v31 = vpack.c.bf16 %v80_v21, %v77_v20  ;;  %v89_v36 = vand.u32 4294901760, %v1408_v28  ;;  %v1423_v37 = vsub.f32 %v46_v11, %v71_v15  ;;  %v57_v61 = vld [vmem:[#allocation2 + $0x78] sm:$0xff]  ;;  %p1322_p8 = scmp.ne.s32.totalorder %s752_s1, %s1321_s27  ;;  %p1327_p10 = scmp.lt.s32.totalorder %s1321_s27, %s1321_s27 }
  0x1a   :  { %1090 = vmatprep.subr.bf16.mxu1 %v1390_v13  ;;  %1188 = vmatpush3.bf16.msra.mxu0 %v1390_v13  ;;  %v176_v29 = vand.u32 4294901760, %v1402_v24  ;;  %v183_v30 = vand.u32 4294901760, %v1404_v25  ;;  %v1425_v38 = vsub.f32 %v47_v12, %v74_v16  ;;  %v1429_v39 = vpack.c.bf16 %v86_v27, %v83_v26 }
  0x1b   :  { %1092 = vmatpush3.bf16.msra.mxu1 %v1390_v13  ;;  %1190 = vmatprep.subr.bf16.mxu0 %v1392_v14  ;;  %v92_v40 = vand.u32 4294901760, %v1416_v32  ;;  %v1438_v45 = vsub.f32 %v42_v2, %v59_v4  ;;  %v190_v47 = vand.u32 4294901760, %v1423_v37  ;;  %v1446_v50 = vsub.f32 %v48_v17, %v77_v20  ;;  %p1328_p11 = por %p1327_p10, %p1326_p9 }
  0x1c   :  { %1094 = vmatprep.subr.bf16.mxu1 %v1392_v14  ;;  %v1418_v33 = vpack.c.bf16 %v183_v30, %v176_v29  ;;  %v177_v34 = vsub.f32 %v1402_v24, %v176_v29  ;;  %v184_v35 = vsub.f32 %v1404_v25, %v183_v30  ;;  %v197_v48 = vand.u32 4294901760, %v1425_v38 }
  0x1d   :  { %v1448_v51 = vsub.f32 %v49_v18, %v80_v21  ;;  %v95_v52 = vand.u32 4294901760, %v1432_v41  ;;  %v191_v54 = vsub.f32 %v1423_v37, %v190_v47  ;;  %v1457_v56 = vpack.c.bf16 %v92_v40, %v89_v36  ;;  %p1329_p12 = pnand %p1328_p11, %p1322_p8 }
  0x1e   :  { %1192 = vmatpush3.bf16.msra.mxu0 %v1392_v14  ;;  %v178_v42 = vand.u32 4294901760, %v177_v34  ;;  %v185_v43 = vand.u32 4294901760, %v184_v35  ;;  %v1451_v53 = vpack.c.bf16 %v197_v48, %v190_v47  ;;  %v198_v55 = vsub.f32 %v1425_v38, %v197_v48 }
  0x1f   :  { %1096 = vmatpush3.bf16.msra.mxu1 %v1392_v14  ;;  %1194 = vmatprep.subr.bf16.mxu0 %v1400_v19  ;;  %v98_v57 = vand.u32 4294901760, %v1436_v44  ;;  %v204_v59 = vand.u32 4294901760, %v1446_v50  ;;  %v211_v60 = vand.u32 4294901760, %v1448_v51  ;;  %v162_v62 = vand.u32 4294901760, %v1438_v45 }
  0x20   :  { %1098 = vmatprep.subr.bf16.mxu1 %v1400_v19  ;;  %v1444_v49 = vpack.c.bf16 %v185_v43, %v178_v42  ;;  %v169_v63 = vand.u32 4294901760, %v1440_v46  ;;  %v192_v0 = vand.u32 4294901760, %v191_v54  ;;  %v199_v1 = vand.u32 4294901760, %v198_v55 }
  0x21   :  { %v1468_v2 = vpack.c.bf16 %v211_v60, %v204_v59  ;;  %v205_v3 = vsub.f32 %v1446_v50, %v204_v59  ;;  %v212_v4 = vsub.f32 %v1448_v51, %v211_v60  ;;  %v1472_v5 = vsub.f32 %v50_v22, %v83_v26 }
  0x22   :  { %1196 = vmatpush3.bf16.msra.mxu0 %v1400_v19  ;;  %v101_v6 = vand.u32 4294901760, %v1460_v58  ;;  %v1475_v7 = vpack.c.bf16 %v199_v1, %v192_v0  ;;  %v1477_v8 = vsub.f32 %v51_v23, %v86_v27  ;;  %v104_v9 = vand.u32 4294901760, %v57_v61 }
  0x23   :  { %1100 = vmatpush3.bf16.msra.mxu1 %v1400_v19  ;;  %1198 = vmatprep.subr.bf16.mxu0 %v1414_v31  ;;  %v206_v10 = vand.u32 4294901760, %v205_v3  ;;  %v213_v11 = vand.u32 4294901760, %v212_v4  ;;  %v218_v12 = vand.u32 4294901760, %v1472_v5  ;;  %v1484_v15 = vpack.c.bf16 %v98_v57, %v95_v52 }
  0x24   :  { %1102 = vmatprep.subr.bf16.mxu1 %v1414_v31  ;;  %v163_v16 = vsub.f32 %v1438_v45, %v162_v62  ;;  %v170_v17 = vsub.f32 %v1440_v46, %v169_v63  ;;  %v225_v18 = vand.u32 4294901760, %v1477_v8  ;;  %v231_v22 = vsub.f32 %v1408_v28, %v89_v36 }
  0x25   :  { %v1489_v20 = vpack.c.bf16 %v213_v11, %v206_v10  ;;  %v219_v21 = vsub.f32 %v1472_v5, %v218_v12  ;;  %v238_v23 = vsub.f32 %v1416_v32, %v92_v40  ;;  %v1501_v35 = vpack.c.bf16 %v104_v9, %v101_v6 }
  0x26   :  { %1200 = vmatpush3.bf16.msra.mxu0 %v1414_v31  ;;  %v1494_v26 = vpack.c.bf16 %v225_v18, %v218_v12  ;;  %v226_v27 = vsub.f32 %v1477_v8, %v225_v18  ;;  %v232_v30 = vand.u32 4294901760, %v231_v22  ;;  %v164_v28 = vand.u32 4294901760, %v163_v16 }
  0x27   :  { %1104 = vmatpush3.bf16.msra.mxu1 %v1414_v31  ;;  %1202 = vmatprep.subr.bf16.mxu0 %v1429_v39  ;;  %v220_v29 = vand.u32 4294901760, %v219_v21  ;;  %v239_v34 = vand.u32 4294901760, %v238_v23  ;;  %v171_v36 = vand.u32 4294901760, %v170_v17  ;;  %v245_v47 = vsub.f32 %v1432_v41, %v95_v52 }
  0x28   :  { %1106 = vmatprep.subr.bf16.mxu1 %v1429_v39  ;;  %v227_v32 = vand.u32 4294901760, %v226_v27  ;;  %v233_v42 = vsub.f32 %v231_v22, %v232_v30  ;;  %v252_v54 = vsub.f32 %v1436_v44, %v98_v57  ;;  %v1217_v0 = vpack.c.bf16 %v169_v63, %v162_v62 }
  0x29   :  { %v1503_v40 = vpack.c.bf16 %v239_v34, %v232_v30  ;;  %v240_v43 = vsub.f32 %v238_v23, %v239_v34  ;;  %v246_v60 = vand.u32 4294901760, %v245_v47  ;;  %v1121_v1 = vpack.c.bf16 %v171_v36, %v164_v28 }
  0x2a   :  { %1204 = vmatpush3.bf16.msra.mxu0 %v1429_v39  ;;  %v1506_v48 = vpack.c.bf16 %v227_v32, %v220_v29  ;;  %v234_v55 = vand.u32 4294901760, %v233_v42  ;;  %v253_v3 = vand.u32 4294901760, %v252_v54  ;;  %v259_v52 = vsub.f32 %v1460_v58, %v101_v6 }
  0x2b   :  { %1108 = vmatpush3.bf16.msra.mxu1 %v1429_v39  ;;  %1206 = vmatprep.subr.bf16.mxu0 %v1457_v56  ;;  %v241_v59 = vand.u32 4294901760, %v240_v43  ;;  %v247_v41 = vsub.f32 %v245_v47, %v246_v60  ;;  %v266_v44 = vsub.f32 %v57_v61, %v104_v9  ;;  %v1526_v9 = vpack.c.bf16 %v1440_v46, %v1438_v45 }
  0x2c   :  { %1110 = vmatprep.subr.bf16.mxu1 %v1457_v56  ;;  %v1516_v57 = vpack.c.bf16 %v253_v3, %v246_v60  ;;  %v254_v10 = vsub.f32 %v252_v54, %v253_v3  ;;  %v260_v12 = vand.u32 4294901760, %v259_v52  ;;  %v1530_v27 = vpack.c.bf16 %v1404_v25, %v1402_v24 }
  0x2d   :  { %v1513_v4 = vpack.c.bf16 %v241_v59, %v234_v55  ;;  %v248_v11 = vand.u32 4294901760, %v247_v41  ;;  %v267_v16 = vand.u32 4294901760, %v266_v44  ;;  %v1534_v29 = vpack.c.bf16 %v1425_v38, %v1423_v37 }
  0x2e   :  { %1208 = vmatpush3.bf16.msra.mxu0 %v1457_v56  ;;  %v255_v62 = vand.u32 4294901760, %v254_v10  ;;  %v261_v17 = vsub.f32 %v259_v52, %v260_v12  ;;  %v1538_v30 = vpack.c.bf16 %v1448_v51, %v1446_v50  ;;  %v1542_v34 = vpack.c.bf16 %v1477_v8, %v1472_v5 }
  0x2f   :  { %1112 = vmatpush3.bf16.msra.mxu1 %v1457_v56  ;;  %1210 = vmatprep.subr.bf16.mxu0 %v1484_v15  ;;  %v1520_v63 = vpack.c.bf16 %v267_v16, %v260_v12  ;;  %v268_v18 = vsub.f32 %v266_v44, %v267_v16  ;;  %v1544_v28 = vpack.c.bf16 %v238_v23, %v231_v22  ;;  %v28_v24 = vlaneseq }
  0x30   :  { %1114 = vmatprep.subr.bf16.mxu1 %v1484_v15  ;;  %v1145_v21 = vpack.c.bf16 %v255_v62, %v248_v11  ;;  %v262_v58 = vand.u32 4294901760, %v261_v17  ;;  %v1546_v45 = vpack.c.bf16 %v252_v54, %v245_v47  ;;  %v1548_v46 = vpack.c.bf16 %v266_v44, %v259_v52 }
  0x31   :  { %v269_v61 = vand.u32 4294901760, %v268_v18  ;;  %v1550_v25 = vand.u32 127, %v28_v24  ;;  %v1351_v37 = vmov 0.0   ;;  %v1352_v47 = vmov 1.0  }
  0x32   :  { %1212 = vmatpush3.bf16.msra.mxu0 %v1484_v15 }
  0x33   :  { %1116 = vmatpush3.bf16.msra.mxu1 %v1484_v15  ;;  %1214 = vmatprep.subr.bf16.mxu0 %v1501_v35  ;;  %v1522_v6 = vpack.c.bf16 %v269_v61, %v262_v58 }
  0x34   :  { %1118 = vmatprep.subr.bf16.mxu1 %v1501_v35 }
  0x36   :  { %1216 = vmatpush3.bf16.msra.mxu0 %v1501_v35 }
  0x37   :  { %1120 = vmatpush3.bf16.msra.mxu1 %v1501_v35  ;;  %1218 = vmatprep.subr.bf16.mxu0 %v1217_v0 }
  0x38   :  { %1122 = vmatprep.subr.bf16.mxu1 %v1121_v1 }
  0x94   :  { %v32_v36 = vpop.permute.xlu0 %31 }
  0x95   :  { %vm36_vm0 = vcmp.eq.s32.totalorder %v1550_v25, %v32_v36 }
  0x96   :  { %v763_v38 = vsel %vm36_vm0, 1.0, %v1351_v37 }
  0x97   :  { %v140_v50 = vsub.f32 %v763_v38, %v763_v38 }
  0x98   :  { %v1555_v51 = vpop.permute.xlu0 %34 }
  0x99   :  { %vm37_vm1 = vcmp.eq.s32.totalorder %v1550_v25, %v1555_v51  ;;  %v141_v5 = vand.u32 4294901760, %v140_v50 }
  0x9a   :  { %v764_v8 = vsel %vm37_vm1, 1.0, %v1351_v37 }
  0x9b   :  { %v1562_v22 = vsub.f32 %v764_v8, %v764_v8  ;;  %1016 = vmatprep.mubr.f32.mxu0 %v141_v5  ;;  %v142_v23 = vsub.f32 %v140_v50, %v141_v5 }
  0x9d   :  { %v143_v32 = vand.u32 4294901760, %v142_v23  ;;  %v151_v42 = vand.u32 4294901760, %v1562_v22 }
  0x9f   :  { %911 = vmatprep.mubr.f32.mxu1 %v143_v32  ;;  %1017 = vmatmul.mubr.f32.vlgmr.msra.gmra.mrb[0].mxu0 %v151_v42  ;;  %v152_v43 = vsub.f32 %v1562_v22, %v151_v42 }
  0xa0   :  { %1220 = vmatpush3.bf16.msra.mxu0 %v1217_v0  ;;  %1051 = vmatprep.mubr.msk.f32.mxu0 %vm36_vm0, %v1352_v47 }
  0xa1   :  { %1222 = vmatprep.subr.bf16.mxu0 %v1418_v33  ;;  %v153_v54 = vand.u32 4294901760, %v152_v43 }
  0xa3   :  { %912 = vmatmul.mubr.f32.vlgmr.msra.gmra.mrb[0].mxu1 %v153_v54 }
  0xa4   :  { %1124 = vmatpush3.bf16.msra.mxu1 %v1121_v1  ;;  %1224 = vmatpush3.bf16.msra.mxu0 %v1418_v33 }
  0xa5   :  { %946 = vmatprep.mubr.msk.f32.mxu1 %vm36_vm0, %v1352_v47  ;;  %1126 = vmatprep.subr.bf16.mxu1 %v1444_v49 }
  0xa6   :  { %1226 = vmatprep.subr.bf16.mxu0 %v1451_v53 }
  0xa8   :  { %1128 = vmatpush3.bf16.msra.mxu1 %v1444_v49  ;;  %1228 = vmatpush3.bf16.msra.mxu0 %v1451_v53 }
  0xa9   :  { %1130 = vmatprep.subr.bf16.mxu1 %v1475_v7  ;;  %1230 = vmatprep.subr.bf16.mxu0 %v1468_v2 }
  0xac   :  { %1132 = vmatpush3.bf16.msra.mxu1 %v1475_v7  ;;  %1232 = vmatpush3.bf16.msra.mxu0 %v1468_v2 }
  0xad   :  { %1134 = vmatprep.subr.bf16.mxu1 %v1489_v20  ;;  %1234 = vmatprep.subr.bf16.mxu0 %v1494_v26 }
  0xb0   :  { %1136 = vmatpush3.bf16.msra.mxu1 %v1489_v20  ;;  %1236 = vmatpush3.bf16.msra.mxu0 %v1494_v26 }
  0xb1   :  { %1138 = vmatprep.subr.bf16.mxu1 %v1506_v48  ;;  %1238 = vmatprep.subr.bf16.mxu0 %v1503_v40 }
  0xb4   :  { %1140 = vmatpush3.bf16.msra.mxu1 %v1506_v48  ;;  %1240 = vmatpush3.bf16.msra.mxu0 %v1503_v40 }
  0xb5   :  { %1142 = vmatprep.subr.bf16.mxu1 %v1513_v4  ;;  %1242 = vmatprep.subr.bf16.mxu0 %v1516_v57 }
  0xb8   :  { %1144 = vmatpush3.bf16.msra.mxu1 %v1513_v4  ;;  %1244 = vmatpush3.bf16.msra.mxu0 %v1516_v57 }
  0xb9   :  { %1146 = vmatprep.subr.bf16.mxu1 %v1145_v21  ;;  %1246 = vmatprep.subr.bf16.mxu0 %v1520_v63 }
  0xbc   :  { %1148 = vmatpush3.bf16.msra.mxu1 %v1145_v21  ;;  %1248 = vmatpush3.bf16.msra.mxu0 %v1520_v63 }
  0xbd   :  { %1150 = vmatprep.subr.bf16.mxu1 %v1522_v6  ;;  %1250 = vmatprep.subr.bf16.mxu0 %v1390_v13 }
  0xbf   :  { %1052 = vmatmul.mubr.msk.f32.vlgmr.msra.gmra.mrb[0].mxu0 %vm37_vm1, %v1352_v47 }
  0xc0   :  { %1152 = vmatpush3.bf16.msra.mxu1 %v1522_v6  ;;  %1252 = vmatpush3.bf16.msra.mxu0 %v1390_v13 }
  0xc1   :  { %1086 = vmatprep.mubr.msk.f32.mxu0 %vm36_vm0, %v1352_v47  ;;  %1154 = vmatprep.subr.bf16.mxu1 %v1526_v9 }
  0xc2   :  { %1254 = vmatprep.subr.bf16.mxu0 %v1392_v14 }
  0xc3   :  { %947 = vmatmul.mubr.msk.f32.vlgmr.msra.gmra.mrb[0].mxu1 %vm37_vm1, %v1352_v47 }
  0xc4   :  { %1156 = vmatpush3.bf16.msra.mxu1 %v1526_v9  ;;  %981 = vmatprep.mubr.f32.mxu1 %v140_v50 }
  0xc5   :  { %1256 = vmatpush3.bf16.msra.mxu0 %v1392_v14  ;;  %1158 = vmatprep.subr.bf16.mxu1 %v1530_v27 }
  0xc6   :  { %1258 = vmatprep.subr.bf16.mxu0 %v1400_v19 }
  0xc8   :  { %1160 = vmatpush3.bf16.msra.mxu1 %v1530_v27 }
  0xc9   :  { %1260 = vmatpush3.bf16.msra.mxu0 %v1400_v19  ;;  %1162 = vmatprep.subr.bf16.mxu1 %v1534_v29 }
  0xca   :  { %1262 = vmatprep.subr.bf16.mxu0 %v1414_v31 }
  0xcc   :  { %1164 = vmatpush3.bf16.msra.mxu1 %v1534_v29 }
  0xcd   :  { %1264 = vmatpush3.bf16.msra.mxu0 %v1414_v31  ;;  %1166 = vmatprep.subr.bf16.mxu1 %v1538_v30 }
  0xce   :  { %1266 = vmatprep.subr.bf16.mxu0 %v1429_v39 }
  0xd0   :  { %1168 = vmatpush3.bf16.msra.mxu1 %v1538_v30 }
  0xd1   :  { %1268 = vmatpush3.bf16.msra.mxu0 %v1429_v39  ;;  %1170 = vmatprep.subr.bf16.mxu1 %v1542_v34 }
  0xd2   :  { %1270 = vmatprep.subr.bf16.mxu0 %v1457_v56 }
  0xd4   :  { %1172 = vmatpush3.bf16.msra.mxu1 %v1542_v34 }
  0xd5   :  { %1272 = vmatpush3.bf16.msra.mxu0 %v1457_v56  ;;  %1174 = vmatprep.subr.bf16.mxu1 %v1544_v28 }
  0xd6   :  { %1274 = vmatprep.subr.bf16.mxu0 %v1484_v15 }
  0xd8   :  { %1176 = vmatpush3.bf16.msra.mxu1 %v1544_v28 }
  0xd9   :  { %1276 = vmatpush3.bf16.msra.mxu0 %v1484_v15  ;;  %1178 = vmatprep.subr.bf16.mxu1 %v1546_v45 }
  0xda   :  { %1278 = vmatprep.subr.bf16.mxu0 %v1501_v35 }
  0xdc   :  { %1180 = vmatpush3.bf16.msra.mxu1 %v1546_v45 }
  0xdd   :  { %1280 = vmatpush3.bf16.msra.mxu0 %v1501_v35  ;;  %1182 = vmatprep.subr.bf16.mxu1 %v1548_v46 }
  0xe0   :  { %1087 = vmatmul.mubr.msk.f32.vlgmr.msra.gmra.mrb[0].mxu0 %vm37_vm1, %v1352_v47  ;;  %1184 = vmatpush3.bf16.msra.mxu1 %v1548_v46 }
  0xe3   :  { %982 = vmatmul.mubr.f32.vlgmr.msra.gmra.mrb[0].mxu1 %v1562_v22 }
 0x1b3   :  { %v1088_v13 = vpop.f32.mrb[0].mxu0 }
 0x1b4   :  { %v732_v14 = vpop.f32.mrb[1].mxu0 }
 0x1b6   :  { %v983_v19 = vpop.f32.mrb[0].mxu1 }
 0x1b7   :  { %v1281_v31 = vadd.f32 %v1088_v13, %v983_v19  ;;  %v416_v33 = vpop.f32.mrb[1].mxu1 }
 0x1b8   :  { %v1282_v39 = vadd.f32 %v732_v14, %v416_v33 }
 0x1b9   :  { %v743_v49 = vmul.f32 5.656854, %v1281_v31 }
 0x1ba   :  { %v742_v53 = vmul.f32 5.656854, %v1282_v39 }
 0x1bb   :  { %745 = vst [vmem:[#allocation5 + $0x8] sm:$0xff] %v743_v49 }
 0x1bc   :  { %744 = vst [vmem:[#allocation5] sm:$0xff] %v742_v53 }
 0x1bd   :  { %1332 = shalt.err (!%p1329_p12)
}
 0x1be   :  { %s1333_s30 = scalar_lea.hbm %s1663_s2, 256 }
 0x1bf   :  { %p1334_p13 = scmp.ne.s32.totalorder %s1663_s2, %s1333_s30  ;;  %p1337_p0 = scmp.lt.u32.totalorder %s1333_s30, %s1663_s2 }
 0x1c1   :  { %p1339_p1 = pnand %p1337_p0, %p1334_p13 }
 0x1c3   :  { %1342 = shalt.err (!%p1339_p1)
}
 0x1c4   :  { %757 = dma.vmem_to_hbm [thread:$0]  %s752_s1, 256, %s1663_s2, [#allocation4], %s1348_s19, %s1348_s19, %s1349_s20  }
 0x1c5   :  { %1345 = dma.done.wait [#allocation4], 256  }
 0x1c6   :  { %1346 = vsyncadd [#allocation4], 4294967040 }
 0x1c7   :  { %761 = vsyncpa [#allocation3], 1 }
 0x1c8   :  { %762 = vsyncpa [#allocation4], 1 }

</bundles_post_ra>
